<compile_context>
chip_gen: v6e
topology: v6e:2x2x1
jax: 0.10.0
libtpu: 0.0.40
codegen_flags: <defaults>
</compile_context>

<pallas_src>
import jax
import jax.numpy as jnp
from jax import lax
from jax.experimental import pallas as pl
from jax.experimental.pallas import tpu as pltpu

N = 16        # num_nodes (= num_nodes_actual = num_nodes_adj)
NFEAT = 16    # input feature dim
NHID = 32     # hidden dim (gc1, gc2)
NOUT = 32     # gc3 output dim
NCLASS = 8    # number of classes
RAND_INIT = 0.5

# Row offsets inside the packed weight slab (all multiples of 8).
_W1_OFF = 0
_W2_OFF = _W1_OFF + NFEAT            # 16
_W3_OFF = _W2_OFF + NHID             # 48
_WL1_OFF = _W3_OFF + NHID            # 80
_WL2_OFF = _WL1_OFF + NHID           # 112
_WL3_OFF = _WL2_OFF + NHID           # 144
_BIAS_OFF = _WL3_OFF + NOUT          # 176
_WPACK_ROWS = _BIAS_OFF + 8          # 184
_WPACK_COLS = NHID                   # 32 (>= NOUT and NCLASS)


def gcn_perturb_kernel(gp_ref, x_ref, w_ref, out_ref):
    # ---- unpack graph pack: [P_tril ; P_tril.T ; adj] (3N, N) ----
    p_tril = gp_ref[0:N, :]
    p_trilt = gp_ref[N:2 * N, :]
    adj = gp_ref[2 * N:3 * N, :]

    # ---- __forward_std perturbation construction ----
    rows = lax.broadcasted_iota(jnp.int32, (N, N), 0)
    cols = lax.broadcasted_iota(jnp.int32, (N, N), 1)
    # symm(tril(sigmoid(P_tril), -1)): lower from P_tril, upper from the
    # pre-transposed copy (no XLU transpose in-kernel), zero diagonal.
    p_symm = (jnp.where(cols < rows, jax.nn.sigmoid(p_tril), 0.0)
              + jnp.where(rows < cols, jax.nn.sigmoid(p_trilt), 0.0))
    a_diff = p_symm * adj                               # A_tilde_diff (edge_del)
    a_pred = jnp.where(p_symm >= 0.5, adj, 0.0)         # (P>=0.5).float() * adj, fused

    # Block-diagonal A so both forwards run as one GCN pass.
    zero = jnp.zeros((N, N), jnp.float32)
    a_blk = jnp.concatenate(
        [jnp.concatenate([a_diff, zero], axis=1),
         jnp.concatenate([zero, a_pred], axis=1)], axis=0)   # (2N, 2N)

    # ---- unpack weight slab ----
    w1 = w_ref[_W1_OFF:_W1_OFF + NFEAT, :]               # (NFEAT, NHID)
    w2 = w_ref[_W2_OFF:_W2_OFF + NHID, :]                # (NHID, NHID)
    w3 = w_ref[_W3_OFF:_W3_OFF + NHID, :]                # (NHID, NOUT)
    wl1 = w_ref[_WL1_OFF:_WL1_OFF + NHID, 0:NCLASS]      # (NHID, NCLASS)
    wl2 = w_ref[_WL2_OFF:_WL2_OFF + NHID, 0:NCLASS]      # (NHID, NCLASS)
    wl3 = w_ref[_WL3_OFF:_WL3_OFF + NOUT, 0:NCLASS]      # (NOUT, NCLASS)
    bias = w_ref[_BIAS_OFF:_BIAS_OFF + 8, :]             # (8, WPACK_COLS)
    b1 = bias[0:1, :]                                    # (1, NHID)
    b2 = bias[1:2, :]                                    # (1, NHID)
    b3 = bias[2:3, 0:NOUT]                               # (1, NOUT)
    bl = bias[3:4, 0:NCLASS]                             # (1, NCLASS)

    # ---- fused 3-layer GCN on the block-diagonal adjacency ----
    x = x_ref[...]                                       # (N, NFEAT)
    xw1 = jnp.dot(x, w1, preferred_element_type=jnp.float32)      # shared x@W1
    xw1_2 = jnp.concatenate([xw1, xw1], axis=0)                   # (2N, NHID)

    h1 = jnp.maximum(
        jnp.dot(a_blk, xw1_2, preferred_element_type=jnp.float32) + b1, 0.0)
    h2 = jnp.maximum(
        jnp.dot(a_blk, jnp.dot(h1, w2, preferred_element_type=jnp.float32),
                preferred_element_type=jnp.float32) + b2, 0.0)
    h3 = jnp.dot(a_blk, jnp.dot(h2, w3, preferred_element_type=jnp.float32),
                 preferred_element_type=jnp.float32) + b3

    # Final Linear over concat([h1,h2,h3]) == sum of split-weight matmuls.
    logits = (jnp.dot(h1, wl1, preferred_element_type=jnp.float32)
              + jnp.dot(h2, wl2, preferred_element_type=jnp.float32)
              + jnp.dot(h3, wl3, preferred_element_type=jnp.float32)
              + bl)                                               # (2N, NCLASS)

    # log_softmax once over the fused logits
    m = jnp.max(logits, axis=-1, keepdims=True)
    s = logits - m
    out_ref[...] = s - jnp.log(jnp.sum(jnp.exp(s), axis=-1, keepdims=True))


def gcn_perturb_forward(p_tril, adj, x, w1, b1, w2, b2, w3, b3, wl, bl):
    # ---- wrapper-side packing (cheap XLA ops, fuse upstream) ----
    graph_pack = jnp.concatenate([p_tril, p_tril.T, adj], axis=0)     # (3N, N)

    def pad_cols(a, width=_WPACK_COLS):
        return jnp.pad(a, ((0, 0), (0, width - a.shape[1])))

    wl1, wl2, wl3 = wl[0:NHID], wl[NHID:2 * NHID], wl[2 * NHID:2 * NHID + NOUT]
    bias_blk = jnp.zeros((8, _WPACK_COLS), jnp.float32)
    bias_blk = bias_blk.at[0:1].set(pad_cols(b1))
    bias_blk = bias_blk.at[1:2].set(pad_cols(b2))
    bias_blk = bias_blk.at[2:3].set(pad_cols(b3))
    bias_blk = bias_blk.at[3:4].set(pad_cols(bl))
    w_pack = jnp.concatenate(
        [w1, w2, w3, pad_cols(wl1), pad_cols(wl2), pad_cols(wl3), bias_blk],
        axis=0)                                                       # (184, 32)

    vmem = pl.BlockSpec(memory_space=pltpu.MemorySpace.VMEM)
    out = pl.pallas_call(
        gcn_perturb_kernel,
        out_shape=jax.ShapeDtypeStruct((2 * N, NCLASS), jnp.float32),
        in_specs=[vmem, vmem, vmem],
        out_specs=vmem,
    )(graph_pack, x, w_pack)
    return out[:N], out[N:]                       # (output_diff, output_pred)


def _uniform(key, shape, lo, hi):
    return jax.random.uniform(key, shape, dtype=jnp.float32, minval=lo, maxval=hi)


if __name__ == "__main__":
    key = jax.random.PRNGKey(0)
    keys = jax.random.split(key, 12)

    # deterministic symmetric 0/1 adjacency, zero diagonal
    upper = (jax.random.uniform(keys[0], (N, N)) < 0.3).astype(jnp.float32)
    upper = jnp.triu(upper, 1)
    adj = upper + upper.T

    # P_tril init (edge_del & rand_init>0, non-bernoulli): U(0, rand_init)
    p_tril = _uniform(keys[1], (N, N), 0.0, RAND_INIT)

    # node features
    x = jax.random.normal(keys[2], (N, NFEAT), dtype=jnp.float32)

    # GraphConvolution weights: U(-1/sqrt(out), 1/sqrt(out)) like the torch impl
    s1 = 1.0 / (NHID ** 0.5)
    w1 = _uniform(keys[3], (NFEAT, NHID), -s1, s1)
    b1 = _uniform(keys[4], (1, NHID), -s1, s1)
    w2 = _uniform(keys[5], (NHID, NHID), -s1, s1)
    b2 = _uniform(keys[6], (1, NHID), -s1, s1)
    s3 = 1.0 / (NOUT ** 0.5)
    w3 = _uniform(keys[7], (NHID, NOUT), -s3, s3)
    b3 = _uniform(keys[8], (1, NOUT), -s3, s3)
    # final Linear: U(-1/sqrt(in), 1/sqrt(in))
    din = NHID + NHID + NOUT
    sl = 1.0 / (din ** 0.5)
    wl = _uniform(keys[9], (din, NCLASS), -sl, sl)
    bl = _uniform(keys[10], (1, NCLASS), -sl, sl)

    out_diff, out_pred = gcn_perturb_forward(
        p_tril, adj, x, w1, b1, w2, b2, w3, b3, wl, bl)
    jax.block_until_ready((out_diff, out_pred))

    assert out_diff.shape == (N, NCLASS) and out_pred.shape == (N, NCLASS)
    # log-softmax rows should sum to ~1 after exp
    assert jnp.allclose(jnp.exp(out_diff).sum(-1), 1.0, atol=1e-4)
    assert jnp.allclose(jnp.exp(out_pred).sum(-1), 1.0, atol=1e-4)

    # cross-check against a pure-JAX reference of the original (two-pass) model
    def ref_forward():
        p_hat = jax.nn.sigmoid(p_tril)
        p_low = jnp.tril(p_hat, -1)
        p_symm = p_low + p_low.T
        a_d = p_symm * adj
        a_p = (p_symm >= 0.5).astype(jnp.float32) * adj

        def model(A):
            h1 = jnp.maximum(A @ (x @ w1) + b1, 0.0)
            h2 = jnp.maximum(A @ (h1 @ w2) + b2, 0.0)
            h3 = A @ (h2 @ w3) + b3
            z = jnp.concatenate([h1, h2, h3], axis=-1) @ wl + bl
            return jax.nn.log_softmax(z, axis=-1)

        return model(a_d), model(a_p)

    ref_diff, ref_pred = ref_forward()
    assert jnp.allclose(out_diff, ref_diff, atol=1e-4, rtol=1e-4)
    assert jnp.allclose(out_pred, ref_pred, atol=1e-4, rtol=1e-4)
    print("KERNEL_OK")
</pallas_src>

<mosaic_0001>
module attributes {stable_mosaic.version = 11 : i64} {
  func.func @gcn_perturb_kernel(%arg0: memref<48x16xf32, #tpu.memory_space<vmem>>, %arg1: memref<16x16xf32, #tpu.memory_space<vmem>>, %arg2: memref<184x32xf32, #tpu.memory_space<vmem>>, %arg3: memref<32x8xf32, #tpu.memory_space<vmem>>) attributes {dimension_semantics = [], scalar_prefetch = 0 : i64, scratch_operands = 0 : i64, tpu.core_type = #tpu.core_type<tc>} {
    %c0 = arith.constant 0 : index
    %c0_0 = arith.constant 0 : index
    %0 = vector.load %arg0[%c0, %c0_0] : memref<48x16xf32, #tpu.memory_space<vmem>>, vector<16x16xf32>
    %c16 = arith.constant 16 : index
    %c0_1 = arith.constant 0 : index
    %1 = vector.load %arg0[%c16, %c0_1] : memref<48x16xf32, #tpu.memory_space<vmem>>, vector<16x16xf32>
    %c32 = arith.constant 32 : index
    %c0_2 = arith.constant 0 : index
    %2 = vector.load %arg0[%c32, %c0_2] : memref<48x16xf32, #tpu.memory_space<vmem>>, vector<16x16xf32>
    %3 = tpu.iota {dimensions = array<i32: 0>} : vector<16x16xi32>
    %4 = tpu.iota {dimensions = array<i32: 1>} : vector<16x16xi32>
    %5 = arith.cmpi slt, %4, %3 : vector<16x16xi32>
    %6 = arith.negf %0 : vector<16x16xf32>
    %7 = math.exp %6 : vector<16x16xf32>
    %cst = arith.constant 1.000000e+00 : f32
    %8 = vector.broadcast %cst : f32 to vector<16x16xf32>
    %9 = arith.addf %8, %7 : vector<16x16xf32>
    %10 = arith.divf %8, %9 : vector<16x16xf32>
    %cst_3 = arith.constant 0.000000e+00 : f32
    %11 = vector.broadcast %cst_3 : f32 to vector<16x16xf32>
    %12 = arith.select %5, %10, %11 : vector<16x16xi1>, vector<16x16xf32>
    %13 = arith.cmpi slt, %3, %4 : vector<16x16xi32>
    %14 = arith.negf %1 : vector<16x16xf32>
    %15 = math.exp %14 : vector<16x16xf32>
    %cst_4 = arith.constant 1.000000e+00 : f32
    %16 = vector.broadcast %cst_4 : f32 to vector<16x16xf32>
    %17 = arith.addf %16, %15 : vector<16x16xf32>
    %18 = arith.divf %16, %17 : vector<16x16xf32>
    %cst_5 = arith.constant 0.000000e+00 : f32
    %19 = vector.broadcast %cst_5 : f32 to vector<16x16xf32>
    %20 = arith.select %13, %18, %19 : vector<16x16xi1>, vector<16x16xf32>
    %21 = arith.addf %12, %20 : vector<16x16xf32>
    %22 = arith.mulf %21, %2 : vector<16x16xf32>
    %cst_6 = arith.constant 5.000000e-01 : f32
    %23 = vector.broadcast %cst_6 : f32 to vector<16x16xf32>
    %24 = arith.cmpf oge, %21, %23 : vector<16x16xf32>
    %cst_7 = arith.constant 0.000000e+00 : f32
    %25 = vector.broadcast %cst_7 : f32 to vector<16x16xf32>
    %26 = arith.select %24, %2, %25 : vector<16x16xi1>, vector<16x16xf32>
    %cst_8 = arith.constant 0.000000e+00 : f32
    %27 = vector.broadcast %cst_8 : f32 to vector<16x16xf32>
    %28 = tpu.concatenate %22, %27 in 1 : vector<16x16xf32>, vector<16x16xf32> -> vector<16x32xf32>
    %29 = tpu.concatenate %27, %26 in 1 : vector<16x16xf32>, vector<16x16xf32> -> vector<16x32xf32>
    %30 = tpu.concatenate %28, %29 in 0 : vector<16x32xf32>, vector<16x32xf32> -> vector<32x32xf32>
    %c0_9 = arith.constant 0 : index
    %c0_10 = arith.constant 0 : index
    %31 = vector.load %arg2[%c0_9, %c0_10] : memref<184x32xf32, #tpu.memory_space<vmem>>, vector<16x32xf32>
    %c16_11 = arith.constant 16 : index
    %c0_12 = arith.constant 0 : index
    %32 = vector.load %arg2[%c16_11, %c0_12] : memref<184x32xf32, #tpu.memory_space<vmem>>, vector<32x32xf32>
    %c48 = arith.constant 48 : index
    %c0_13 = arith.constant 0 : index
    %33 = vector.load %arg2[%c48, %c0_13] : memref<184x32xf32, #tpu.memory_space<vmem>>, vector<32x32xf32>
    %c80 = arith.constant 80 : index
    %c0_14 = arith.constant 0 : index
    %34 = vector.load %arg2[%c80, %c0_14] : memref<184x32xf32, #tpu.memory_space<vmem>>, vector<32x8xf32>
    %c112 = arith.constant 112 : index
    %c0_15 = arith.constant 0 : index
    %35 = vector.load %arg2[%c112, %c0_15] : memref<184x32xf32, #tpu.memory_space<vmem>>, vector<32x8xf32>
    %c144 = arith.constant 144 : index
    %c0_16 = arith.constant 0 : index
    %36 = vector.load %arg2[%c144, %c0_16] : memref<184x32xf32, #tpu.memory_space<vmem>>, vector<32x8xf32>
    %c176 = arith.constant 176 : index
    %c0_17 = arith.constant 0 : index
    %37 = vector.load %arg2[%c176, %c0_17] : memref<184x32xf32, #tpu.memory_space<vmem>>, vector<8x32xf32>
    %38 = vector.extract_strided_slice %37 {offsets = [0, 0], sizes = [1, 32], strides = [1, 1]} : vector<8x32xf32> to vector<1x32xf32>
    %39 = vector.extract_strided_slice %37 {offsets = [1, 0], sizes = [1, 32], strides = [1, 1]} : vector<8x32xf32> to vector<1x32xf32>
    %40 = vector.extract_strided_slice %37 {offsets = [2, 0], sizes = [1, 32], strides = [1, 1]} : vector<8x32xf32> to vector<1x32xf32>
    %41 = vector.extract_strided_slice %37 {offsets = [3, 0], sizes = [1, 8], strides = [1, 1]} : vector<8x32xf32> to vector<1x8xf32>
    %c0_18 = arith.constant 0 : index
    %c0_19 = arith.constant 0 : index
    %42 = vector.load %arg1[%c0_18, %c0_19] : memref<16x16xf32, #tpu.memory_space<vmem>>, vector<16x16xf32>
    %cst_20 = arith.constant dense<0.000000e+00> : vector<16x32xf32>
    %43 = tpu.matmul %42, %31, %cst_20 {dimension_numbers = #tpu.dot_dimension_numbers<[1], [0], [0], [1], [0, 0, 1, 1], [], []>} : vector<16x16xf32>, vector<16x32xf32>, vector<16x32xf32> -> vector<16x32xf32>
    %44 = tpu.concatenate %43, %43 in 0 : vector<16x32xf32>, vector<16x32xf32> -> vector<32x32xf32>
    %cst_21 = arith.constant dense<0.000000e+00> : vector<32x32xf32>
    %45 = tpu.matmul %30, %44, %cst_21 {dimension_numbers = #tpu.dot_dimension_numbers<[1], [0], [0], [1], [0, 0, 1, 1], [], []>} : vector<32x32xf32>, vector<32x32xf32>, vector<32x32xf32> -> vector<32x32xf32>
    %46 = vector.broadcast %38 : vector<1x32xf32> to vector<32x32xf32>
    %47 = arith.addf %45, %46 : vector<32x32xf32>
    %cst_22 = arith.constant 0.000000e+00 : f32
    %48 = vector.broadcast %cst_22 : f32 to vector<32x32xf32>
    %49 = arith.maximumf %47, %48 : vector<32x32xf32>
    %cst_23 = arith.constant dense<0.000000e+00> : vector<32x32xf32>
    %50 = tpu.matmul %49, %32, %cst_23 {dimension_numbers = #tpu.dot_dimension_numbers<[1], [0], [0], [1], [0, 0, 1, 1], [], []>} : vector<32x32xf32>, vector<32x32xf32>, vector<32x32xf32> -> vector<32x32xf32>
    %cst_24 = arith.constant dense<0.000000e+00> : vector<32x32xf32>
    %51 = tpu.matmul %30, %50, %cst_24 {dimension_numbers = #tpu.dot_dimension_numbers<[1], [0], [0], [1], [0, 0, 1, 1], [], []>} : vector<32x32xf32>, vector<32x32xf32>, vector<32x32xf32> -> vector<32x32xf32>
    %52 = vector.broadcast %39 : vector<1x32xf32> to vector<32x32xf32>
    %53 = arith.addf %51, %52 : vector<32x32xf32>
    %cst_25 = arith.constant 0.000000e+00 : f32
    %54 = vector.broadcast %cst_25 : f32 to vector<32x32xf32>
    %55 = arith.maximumf %53, %54 : vector<32x32xf32>
    %cst_26 = arith.constant dense<0.000000e+00> : vector<32x32xf32>
    %56 = tpu.matmul %55, %33, %cst_26 {dimension_numbers = #tpu.dot_dimension_numbers<[1], [0], [0], [1], [0, 0, 1, 1], [], []>} : vector<32x32xf32>, vector<32x32xf32>, vector<32x32xf32> -> vector<32x32xf32>
    %cst_27 = arith.constant dense<0.000000e+00> : vector<32x32xf32>
    %57 = tpu.matmul %30, %56, %cst_27 {dimension_numbers = #tpu.dot_dimension_numbers<[1], [0], [0], [1], [0, 0, 1, 1], [], []>} : vector<32x32xf32>, vector<32x32xf32>, vector<32x32xf32> -> vector<32x32xf32>
    %58 = vector.broadcast %40 : vector<1x32xf32> to vector<32x32xf32>
    %59 = arith.addf %57, %58 : vector<32x32xf32>
    %cst_28 = arith.constant dense<0.000000e+00> : vector<32x8xf32>
    %60 = tpu.matmul %49, %34, %cst_28 {dimension_numbers = #tpu.dot_dimension_numbers<[1], [0], [0], [1], [0, 0, 1, 1], [], []>} : vector<32x32xf32>, vector<32x8xf32>, vector<32x8xf32> -> vector<32x8xf32>
    %cst_29 = arith.constant dense<0.000000e+00> : vector<32x8xf32>
    %61 = tpu.matmul %55, %35, %cst_29 {dimension_numbers = #tpu.dot_dimension_numbers<[1], [0], [0], [1], [0, 0, 1, 1], [], []>} : vector<32x32xf32>, vector<32x8xf32>, vector<32x8xf32> -> vector<32x8xf32>
    %62 = arith.addf %60, %61 : vector<32x8xf32>
    %cst_30 = arith.constant dense<0.000000e+00> : vector<32x8xf32>
    %63 = tpu.matmul %59, %36, %cst_30 {dimension_numbers = #tpu.dot_dimension_numbers<[1], [0], [0], [1], [0, 0, 1, 1], [], []>} : vector<32x32xf32>, vector<32x8xf32>, vector<32x8xf32> -> vector<32x8xf32>
    %64 = arith.addf %62, %63 : vector<32x8xf32>
    %65 = vector.broadcast %41 : vector<1x8xf32> to vector<32x8xf32>
    %66 = arith.addf %64, %65 : vector<32x8xf32>
    %cst_31 = arith.constant dense<0xFF800000> : vector<32xf32>
    %67 = vector.multi_reduction <maximumf>, %66, %cst_31 [1] : vector<32x8xf32> to vector<32xf32>
    %68 = vector.shape_cast %67 : vector<32xf32> to vector<32x1xf32>
    %69 = vector.broadcast %68 : vector<32x1xf32> to vector<32x8xf32>
    %70 = arith.subf %66, %69 : vector<32x8xf32>
    %71 = math.exp %70 : vector<32x8xf32>
    %cst_32 = arith.constant dense<0.000000e+00> : vector<32xf32>
    %72 = vector.multi_reduction <add>, %71, %cst_32 [1] : vector<32x8xf32> to vector<32xf32>
    %73 = vector.shape_cast %72 : vector<32xf32> to vector<32x1xf32>
    %74 = math.log %73 : vector<32x1xf32>
    %75 = vector.broadcast %74 : vector<32x1xf32> to vector<32x8xf32>
    %76 = arith.subf %70, %75 : vector<32x8xf32>
    %c0_33 = arith.constant 0 : index
    %c0_34 = arith.constant 0 : index
    %77 = vector.load %arg3[%c0_33, %c0_34] : memref<32x8xf32, #tpu.memory_space<vmem>>, vector<32x8xf32>
    tpu.vector_store %arg3[%c0_33, %c0_34], %76 {strides = array<i32>} : memref<32x8xf32, #tpu.memory_space<vmem>>, vector<32x8xf32>,
    return
  }
}

</mosaic_0001>

<bundles_post_ra>
// kernel: tpu_custom_call.1
= control target key start
LH: loop header
LB: loop body
LE: loop exit
PB: predicated region body
PF: predicated region fallthrough
CT: control target
= control target key end

     0   :  { %vm65_vm0 = vcmask 130048   ;;  %v20_v20 = vlaneseq  ;;  %s1260_s4 = smov 16   ;;  %vm188_vm7 = vcmask 261120   ;;  %vm945_vm8 = vcmask 64512   ;;  %s1499_s2 = inlined_call_operand.vmem [shape: f32[184,32], index: 2, kind: input, shape index: {}]   ;;  %s1500_s1 = inlined_call_operand.vmem [shape: f32[16,16], index: 1, kind: input, shape index: {}]   ;;  %s1501_s0 = inlined_call_operand.vmem [shape: f32[48,16], index: 0, kind: input, shape index: {}]   ;;  %s1502_s3 = inlined_call_operand.vmem [shape: f32[32,8], index: 3, kind: output, shape index: {}]  }
   0x1   :  { %v79_v0 = vld [vmem:[%s1499_s2 + $0x8] sm:$0xff]  ;;  %v78_v1 = vld [vmem:[%s1499_s2] sm:$0xff]  ;;  %v16_v6 = vld [vmem:[%s1501_s0 + $0x10] sm:$0xff] }
   0x2   :  { %v101_v2 = vld [vmem:[%s1500_s1] sm:$0xff]  ;;  %1108 = vmatprep.subr.mxu0 %v79_v0  ;;  %v15_v4 = vld [vmem:[%s1501_s0 + $0x8] sm:$0xff]  ;;  %v17_v7 = vld [vmem:[%s1501_s0 + $0x18] sm:$0xff]  ;;  %v1004_v10 = vmul.f32 -1.442695, %v16_v6  ;;  %v1307_v21 = vshrl.u32 %v20_v20, 7 }
   0x3   :  { %1112 = vmatprep.mubr.msk.f32.mxu0 %vm65_vm0, %v101_v2  ;;  %v14_v3 = vld [vmem:[%s1501_s0] sm:$0xff]  ;;  %1109 = vmatpush3.msra.mxu0 %v79_v0  ;;  %v102_v5 = vld [vmem:[%s1500_s1 + $0x8] sm:$0xff]  ;;  %v1003_v9 = vmul.f32 -1.442695, %v15_v4  ;;  %v1005_v11 = vmul.f32 -1.442695, %v17_v7 }
   0x4   :  { %v1002_v8 = vmul.f32 -1.442695, %v14_v3  ;;  %1110 = vmatprep.subr.mxu0 %v78_v1  ;;  %v24_v22 = vand.u32 127, %v20_v20  ;;  %v22_v23 = vadd.s32 8, %v1307_v21  ;;  %v18_v31 = vld [vmem:[%s1501_s0 + $0x20] sm:$0xff]  ;;  %v19_v35 = vld [vmem:[%s1501_s0 + $0x28] sm:$0xff] }
   0x5   :  { %1111 = vmatpush3.msra.mxu0 %v78_v1  ;;  %v83_v48 = vld [vmem:[%s1499_s2 + $0x28] sm:$0xff]  ;;  %v82_v49 = vld [vmem:[%s1499_s2 + $0x20] sm:$0xff]  ;;  %v81_v50 = vld [vmem:[%s1499_s2 + $0x18] sm:$0xff]  ;;  %v186_v52 = vsub.s32 0, %v1307_v21 }
   0x6   :  { %1228 = vpow2.f32 %v1002_v8  ;;  %1113 = vmatmul.mubr.msk.f32.vlgmr.msra.gmra.mxu0 %vm65_vm0, %v102_v5  ;;  %vm25_vm1 = vcmp.lt.s32.totalorder %v24_v22, %v1307_v21  ;;  %vm26_vm2 = vcmp.lt.s32.totalorder %v24_v22, %v22_v23  ;;  %vm41_vm3 = vcmp.lt.s32.totalorder %v1307_v21, %v24_v22  ;;  %1129 = vmatprep.subr.mxu0 %v83_v48  ;;  %v80_v51 = vld [vmem:[%s1499_s2 + $0x10] sm:$0xff]  ;;  %v87_v7 = vld [vmem:[%s1499_s2 + $0x48] sm:$0xff]  ;;  %v86_v8 = vld [vmem:[%s1499_s2 + $0x40] sm:$0xff] }
   0x7   :  { %1230 = vpow2.f32 %v1003_v9  ;;  %vm42_vm4 = vcmp.lt.s32.totalorder %v22_v23, %v24_v22  ;;  %1130 = vmatpush3.msra.mxu0 %v83_v48  ;;  %v1356_v53 = vld [vmem:[%s1499_s2 + $0xb0] sm:$0xff]  ;;  %v85_v9 = vld [vmem:[%s1499_s2 + $0x38] sm:$0xff] }
   0x8   :  { %1232 = vpow2.f32 %v1004_v10  ;;  %1131 = vmatprep.subr.mxu0 %v82_v49  ;;  %v187_v54 = vrot.slane %v1356_v53, %v186_v52  ;;  %v84_v10 = vld [vmem:[%s1499_s2 + $0x30] sm:$0xff] }
   0x9   :  { %1234 = vpow2.f32 %v1005_v11  ;;  %1132 = vmatpush3.msra.mxu0 %v82_v49  ;;  %v95_v11 = vld [vmem:[%s1499_s2 + $0x88] sm:$0xff] }
   0xa   :  { %1133 = vmatprep.subr.mxu0 %v81_v50 }
   0xb   :  { %1134 = vmatpush3.msra.mxu0 %v81_v50 }
   0xc   :  { %1135 = vmatprep.subr.mxu0 %v80_v51 }
   0xd   :  { %1136 = vmatpush3.msra.mxu0 %v80_v51 }
   0xe   :  { %1157 = vmatprep.subr.mxu0 %v87_v7 }
  0x13   :  { %v1229_v12 = vpop.eup %1228 }
  0x14   :  { %v1231_v13 = vpop.eup %1230  ;;  %v33_v14 = vadd.f32 1.0, %v1229_v12  ;;  %v389_v12 = vsub.s32 1, %v1307_v21 }
  0x15   :  { %v1233_v15 = vpop.eup %1232  ;;  %v34_v16 = vadd.f32 1.0, %v1231_v13 }
  0x16   :  { %v1235_v17 = vpop.eup %1234  ;;  %1236 = vrcp.f32 %v33_v14  ;;  %v49_v18 = vadd.f32 1.0, %v1233_v15  ;;  %v390_v13 = vrot.slane %v1356_v53, %v389_v12 }
  0x17   :  { %1238 = vrcp.f32 %v34_v16  ;;  %v50_v19 = vadd.f32 1.0, %v1235_v17 }
  0x18   :  { %1240 = vrcp.f32 %v49_v18 }
  0x19   :  { %1242 = vrcp.f32 %v50_v19 }
  0x23   :  { %v1237_v24 = vpop.eup %1236 }
  0x24   :  { %v1239_v25 = vpop.eup %1238  ;;  %v39_v26 = vsel %vm25_vm1, %v1237_v24, 0.0 }
  0x25   :  { %v1241_v27 = vpop.eup %1240  ;;  %v40_v28 = vsel %vm26_vm2, %v1239_v25, 0.0  ;;  %v94_v25 = vld [vmem:[%s1499_s2 + $0x80] sm:$0xff] }
  0x26   :  { %v1243_v29 = vpop.eup %1242  ;;  %v55_v30 = vsel %vm41_vm3, %v1241_v27, 0.0  ;;  %v93_v27 = vld [vmem:[%s1499_s2 + $0x78] sm:$0xff] }
  0x27   :  { %v57_v32 = vadd.f32 %v55_v30, %v39_v26  ;;  %v56_v33 = vsel %vm42_vm4, %v1243_v29, 0.0  ;;  %v92_v29 = vld [vmem:[%s1499_s2 + $0x70] sm:$0xff]  ;;  %v99_v30 = vld [vmem:[%s1499_s2 + $0xa8] sm:$0xff] }
  0x28   :  { %v58_v34 = vadd.f32 %v56_v33, %v40_v28 }
  0x29   :  { %vm61_vm5 = vcmp.ge.f32.partialorder %v57_v32, 0.5  ;;  %v59_v39 = vmul.f32 %v57_v32, %v18_v31 }
  0x2a   :  { %v63_v36 = vsel %vm61_vm5, %v18_v31, 0.0  ;;  %v60_v37 = vmul.f32 %v58_v34, %v19_v35  ;;  %vm62_vm6 = vcmp.ge.f32.partialorder %v58_v34, 0.5 }
  0x2b   :  { %70 = vrot.lane.b32.xlu0 %v63_v36, %s1260_s4  ;;  %v64_v38 = vsel %vm62_vm6, %v19_v35, 0.0  ;;  %v1319_v40 = vsel %vm65_vm0, %v59_v39, 0.0  ;;  %v91_v35 = vld [vmem:[%s1499_s2 + $0x68] sm:$0xff]  ;;  %v90_v36 = vld [vmem:[%s1499_s2 + $0x60] sm:$0xff] }
  0x2c   :  { %1123 = vmatprep.mubr.msk.f32.mxu1 %vm188_vm7, %v1319_v40  ;;  %v1324_v44 = vsel %vm65_vm0, %v60_v37, 0.0  ;;  %v89_v37 = vld [vmem:[%s1499_s2 + $0x58] sm:$0xff]  ;;  %v98_v39 = vld [vmem:[%s1499_s2 + $0xa0] sm:$0xff] }
  0x2f   :  { %72 = vrot.lane.b32.xlu0 %v64_v38, %s1260_s4  ;;  %v88_v38 = vld [vmem:[%s1499_s2 + $0x50] sm:$0xff] }
  0x9d   :  { %v71_v42 = vpop.permute.xlu0 %70 }
  0x9e   :  { %v1327_v45 = vsel %vm65_vm0, 0.0, %v71_v42  ;;  %v579_v42 = vsub.s32 2, %v1307_v21 }
  0xa1   :  { %v73_v46 = vpop.permute.xlu0 %72 }
  0xa2   :  { %v1334_v47 = vsel %vm65_vm0, 0.0, %v73_v46 }
  0xc6   :  { %v1114_v41 = vpop.f32.mrf.mxu0 }
  0xc7   :  { %1115 = vmatprep.subr.mxu1 %v1114_v41 }
  0xc8   :  { %v175_v43 = vpop.f32.mrf.mxu0  ;;  %1116 = vmatpush3.msra.mxu1 %v1114_v41 }
  0xc9   :  { %1117 = vmatprep.subr.mxu1 %v175_v43 }
  0xca   :  { %1118 = vmatpush3.msra.mxu1 %v175_v43 }
  0xcb   :  { %1119 = vmatprep.subr.mxu1 %v1114_v41 }
  0xcc   :  { %1120 = vmatpush3.msra.mxu1 %v1114_v41  ;;  %v96_v41 = vld [vmem:[%s1499_s2 + $0x90] sm:$0xff] }
  0xcd   :  { %1121 = vmatprep.subr.mxu1 %v175_v43 }
  0xce   :  { %1122 = vmatpush3.msra.mxu1 %v175_v43  ;;  %v580_v43 = vrot.slane %v1356_v53, %v579_v42 }
  0xcf   :  { %1124 = vmatmul.mubr.msk.f32.vlgmr.msra.gmra.mxu1 %vm188_vm7, %v1324_v44 }
  0xd0   :  { %1126 = vmatprep.mubr.msk.f32.mxu1 %vm188_vm7, %v1327_v45 }
  0xd3   :  { %1127 = vmatmul.mubr.msk.f32.gmra.mxu1 %vm188_vm7, %v1334_v47 }
  0xd4   :  { %1151 = vmatprep.mubr.msk.f32.mxu1 %vm188_vm7, %v1319_v40 }
 0x18f   :  { %v1125_v55 = vpop.f32.mrf.mxu1 }
 0x190   :  { %v1359_v56 = vadd.f32 %v1125_v55, %v187_v54 }
 0x191   :  { %v267_v57 = vpop.f32.mrf.mxu1 }
 0x192   :  { %v1361_v58 = vadd.f32 %v267_v57, %v187_v54  ;;  %v287_v61 = vmax.f32 %v1359_v56, 0.0 }
 0x193   :  { %v1128_v59 = vpop.f32.mrf.mxu1 }
 0x194   :  { %v286_v60 = vmax.f32 %v1361_v58, 0.0  ;;  %v1365_v62 = vadd.f32 %v1128_v59, %v187_v54  ;;  %v939_v58 = vsub.s32 3, %v1307_v21 }
 0x195   :  { %v277_v63 = vpop.f32.mrf.mxu1 }
 0x196   :  { %v1367_v0 = vadd.f32 %v277_v63, %v187_v54  ;;  %1137 = vmatprep.mubr.msk.f32.mxu0 %vm188_vm7, %v286_v60  ;;  %v289_v2 = vmax.f32 %v1365_v62, 0.0  ;;  %v940_v62 = vrot.slane %v1356_v53, %v939_v58 }
 0x197   :  { %1138 = vmatmul.mubr.msk.f32.vlgmr.msra.gmra.mxu0 %vm188_vm7, %v287_v61 }
 0x198   :  { %v288_v1 = vmax.f32 %v1367_v0, 0.0  ;;  %1158 = vmatpush3.msra.mxu0 %v87_v7 }
 0x199   :  { %1159 = vmatprep.subr.mxu0 %v86_v8 }
 0x19a   :  { %1140 = vmatprep.mubr.msk.f32.mxu0 %vm188_vm7, %v288_v1  ;;  %1160 = vmatpush3.msra.mxu0 %v86_v8 }
 0x19b   :  { %1141 = vmatmul.mubr.msk.f32.gmra.mxu0 %vm188_vm7, %v289_v2  ;;  %1161 = vmatprep.subr.mxu0 %v85_v9 }
 0x19c   :  { %1162 = vmatpush3.msra.mxu0 %v85_v9 }
 0x19d   :  { %1163 = vmatprep.subr.mxu0 %v84_v10 }
 0x19e   :  { %1164 = vmatpush3.msra.mxu0 %v84_v10 }
 0x19f   :  { %1185 = vmatprep.subr.mxu0 %v95_v11 }
 0x257   :  { %v1139_v3 = vpop.f32.mrf.mxu0 }
 0x259   :  { %v368_v4 = vpop.f32.mrf.mxu0 }
 0x25b   :  { %v1142_v5 = vpop.f32.mrf.mxu0 }
 0x25c   :  { %1143 = vmatprep.subr.mxu1 %v1142_v5 }
 0x25d   :  { %v378_v6 = vpop.f32.mrf.mxu0  ;;  %1144 = vmatpush3.msra.mxu1 %v1142_v5 }
 0x25e   :  { %1145 = vmatprep.subr.mxu1 %v378_v6 }
 0x25f   :  { %1146 = vmatpush3.msra.mxu1 %v378_v6 }
 0x260   :  { %1147 = vmatprep.subr.mxu1 %v1139_v3 }
 0x261   :  { %1148 = vmatpush3.msra.mxu1 %v1139_v3 }
 0x262   :  { %1149 = vmatprep.subr.mxu1 %v368_v4 }
 0x263   :  { %1150 = vmatpush3.msra.mxu1 %v368_v4 }
 0x264   :  { %1152 = vmatmul.mubr.msk.f32.vlgmr.msra.gmra.mxu1 %vm188_vm7, %v1324_v44 }
 0x265   :  { %1154 = vmatprep.mubr.msk.f32.mxu1 %vm188_vm7, %v1327_v45 }
 0x268   :  { %1155 = vmatmul.mubr.msk.f32.gmra.mxu1 %vm188_vm7, %v1334_v47 }
 0x269   :  { %1179 = vmatprep.mubr.msk.f32.mxu1 %vm188_vm7, %v1319_v40  ;;  %v97_v40 = vld [vmem:[%s1499_s2 + $0x98] sm:$0xff] }
 0x324   :  { %v1153_v14 = vpop.f32.mrf.mxu1 }
 0x325   :  { %v463_v15 = vadd.f32 %v1153_v14, %v390_v13 }
 0x326   :  { %v457_v16 = vpop.f32.mrf.mxu1 }
 0x327   :  { %v458_v17 = vadd.f32 %v457_v16, %v390_v13  ;;  %v477_v20 = vmax.f32 %v463_v15, 0.0 }
 0x328   :  { %v1156_v18 = vpop.f32.mrf.mxu1 }
 0x329   :  { %v476_v19 = vmax.f32 %v458_v17, 0.0  ;;  %v473_v22 = vadd.f32 %v1156_v18, %v390_v13 }
 0x32a   :  { %v467_v23 = vpop.f32.mrf.mxu1 }
 0x32b   :  { %v468_v24 = vadd.f32 %v467_v23, %v390_v13  ;;  %1165 = vmatprep.mubr.msk.f32.mxu0 %vm188_vm7, %v476_v19  ;;  %v479_v28 = vmax.f32 %v473_v22, 0.0 }
 0x32c   :  { %1166 = vmatmul.mubr.msk.f32.vlgmr.msra.gmra.mxu0 %vm188_vm7, %v477_v20 }
 0x32d   :  { %v478_v26 = vmax.f32 %v468_v24, 0.0  ;;  %1186 = vmatpush3.msra.mxu0 %v95_v11 }
 0x32e   :  { %1187 = vmatprep.subr.mxu0 %v94_v25 }
 0x32f   :  { %1168 = vmatprep.mubr.msk.f32.mxu0 %vm188_vm7, %v478_v26  ;;  %1188 = vmatpush3.msra.mxu0 %v94_v25 }
 0x330   :  { %1169 = vmatmul.mubr.msk.f32.gmra.mxu0 %vm188_vm7, %v479_v28  ;;  %1189 = vmatprep.subr.mxu0 %v93_v27 }
 0x331   :  { %1190 = vmatpush3.msra.mxu0 %v93_v27  ;;  %1193 = vmatprep.mubr.msk.f32.mxu0 %vm188_vm7, %v476_v19 }
 0x332   :  { %1191 = vmatprep.subr.mxu0 %v92_v29 }
 0x333   :  { %1192 = vmatpush3.msra.mxu0 %v92_v29 }
 0x334   :  { %1194 = vmatmul.mubr.msk.f32.vlgmr.msra.gmra.mxu0 %vm188_vm7, %v477_v20  ;;  %1213 = vmatprep.subr.mxu0 %v99_v30 }
 0x335   :  { %1196 = vmatprep.mubr.msk.f32.mxu0 %vm188_vm7, %v478_v26  ;;  %1214 = vmatpush3.msra.mxu0 %v99_v30 }
 0x336   :  { %1215 = vmatprep.subr.mxu0 %v98_v39 }
 0x337   :  { %1216 = vmatpush3.msra.mxu0 %v98_v39 }
 0x338   :  { %1197 = vmatmul.mubr.msk.f32.gmra.mxu0 %vm188_vm7, %v479_v28  ;;  %1217 = vmatprep.subr.mxu0 %v97_v40 }
 0x339   :  { %1218 = vmatpush3.msra.mxu0 %v97_v40 }
 0x33a   :  { %1219 = vmatprep.subr.mxu0 %v96_v41 }
 0x33b   :  { %1220 = vmatpush3.msra.mxu0 %v96_v41 }
 0x3ec   :  { %v1167_v31 = vpop.f32.mrf.mxu0 }
 0x3ee   :  { %v558_v32 = vpop.f32.mrf.mxu0 }
 0x3f0   :  { %v1170_v33 = vpop.f32.mrf.mxu0 }
 0x3f1   :  { %1171 = vmatprep.subr.mxu1 %v1170_v33 }
 0x3f2   :  { %v568_v34 = vpop.f32.mrf.mxu0  ;;  %1172 = vmatpush3.msra.mxu1 %v1170_v33 }
 0x3f3   :  { %1173 = vmatprep.subr.mxu1 %v568_v34 }
 0x3f4   :  { %1174 = vmatpush3.msra.mxu1 %v568_v34  ;;  %v1195_v52 = vpop.f32.mrf.mxu0 }
 0x3f5   :  { %1175 = vmatprep.subr.mxu1 %v1167_v31 }
 0x3f6   :  { %1176 = vmatpush3.msra.mxu1 %v1167_v31  ;;  %v732_v54 = vpop.f32.mrf.mxu0 }
 0x3f7   :  { %1177 = vmatprep.subr.mxu1 %v558_v32 }
 0x3f8   :  { %1178 = vmatpush3.msra.mxu1 %v558_v32  ;;  %v1198_v56 = vpop.f32.mrf.mxu0 }
 0x3f9   :  { %1180 = vmatmul.mubr.msk.f32.vlgmr.msra.gmra.mxu1 %vm188_vm7, %v1324_v44  ;;  %1199 = vmatprep.subr.mxu1 %v91_v35 }
 0x3fa   :  { %1182 = vmatprep.mubr.msk.f32.mxu1 %vm188_vm7, %v1327_v45  ;;  %1200 = vmatpush3.msra.mxu1 %v91_v35  ;;  %v742_v59 = vpop.f32.mrf.mxu0 }
 0x3fb   :  { %1201 = vmatprep.subr.mxu1 %v90_v36 }
 0x3fc   :  { %1202 = vmatpush3.msra.mxu1 %v90_v36 }
 0x3fd   :  { %1183 = vmatmul.mubr.msk.f32.gmra.mxu1 %vm188_vm7, %v1334_v47  ;;  %1203 = vmatprep.subr.mxu1 %v89_v37 }
 0x3fe   :  { %1204 = vmatpush3.msra.mxu1 %v89_v37  ;;  %1207 = vmatprep.mubr.msk.f32.mxu1 %vm188_vm7, %v286_v60 }
 0x3ff   :  { %1205 = vmatprep.subr.mxu1 %v88_v38 }
 0x400   :  { %1206 = vmatpush3.msra.mxu1 %v88_v38 }
 0x401   :  { %1208 = vmatmul.mubr.msk.f32.vlgmr.msra.gmra.mxu1 %vm188_vm7, %v287_v61 }
 0x402   :  { %1210 = vmatprep.mubr.msk.f32.mxu1 %vm188_vm7, %v288_v1 }
 0x405   :  { %1211 = vmatmul.mubr.msk.f32.gmra.mxu1 %vm188_vm7, %v289_v2 }
 0x4b9   :  { %v1181_v44 = vpop.f32.mrf.mxu1 }
 0x4ba   :  { %v653_v47 = vadd.f32 %v1181_v44, %v580_v43 }
 0x4bb   :  { %v647_v45 = vpop.f32.mrf.mxu1 }
 0x4bc   :  { %v648_v46 = vadd.f32 %v647_v45, %v580_v43 }
 0x4bd   :  { %v1184_v48 = vpop.f32.mrf.mxu1 }
 0x4be   :  { %1221 = vmatprep.mubr.msk.f32.mxu0 %vm188_vm7, %v648_v46  ;;  %v663_v51 = vadd.f32 %v1184_v48, %v580_v43 }
 0x4bf   :  { %v657_v49 = vpop.f32.mrf.mxu1  ;;  %1222 = vmatmul.mubr.msk.f32.vlgmr.msra.gmra.mxu0 %vm188_vm7, %v653_v47 }
 0x4c0   :  { %v658_v50 = vadd.f32 %v657_v49, %v580_v43 }
 0x4c1   :  { %v1209_v55 = vpop.f32.mrf.mxu1 }
 0x4c2   :  { %1224 = vmatprep.mubr.msk.f32.mxu0 %vm188_vm7, %v658_v50  ;;  %v823_v61 = vadd.f32 %v1209_v55, %v1195_v52 }
 0x4c3   :  { %1225 = vmatmul.mubr.msk.f32.gmra.mxu0 %vm188_vm7, %v663_v51  ;;  %v817_v57 = vpop.f32.mrf.mxu1 }
 0x4c4   :  { %v818_v0 = vadd.f32 %v817_v57, %v732_v54 }
 0x4c5   :  { %v1212_v60 = vpop.f32.mrf.mxu1 }
 0x4c6   :  { %v833_v4 = vadd.f32 %v1212_v60, %v1198_v56 }
 0x4c7   :  { %v827_v2 = vpop.f32.mrf.mxu1 }
 0x4c8   :  { %v828_v8 = vadd.f32 %v827_v2, %v742_v59 }
 0x57f   :  { %v1223_v63 = vpop.f32.mrf.mxu0 }
 0x580   :  { %v934_v1 = vadd.f32 %v1223_v63, %v823_v61 }
 0x581   :  { %v914_v3 = vpop.f32.mrf.mxu0 }
 0x582   :  { %v933_v5 = vadd.f32 %v914_v3, %v818_v0  ;;  %v942_v6 = vadd.f32 %v940_v62, %v934_v1 }
 0x583   :  { %v1226_v7 = vpop.f32.mrf.mxu0 }
 0x584   :  { %v936_v9 = vadd.f32 %v1226_v7, %v833_v4  ;;  %v949_v10 = vsel %vm945_vm8, %v942_v6, -inf  ;;  %v941_v21 = vadd.f32 %v940_v62, %v933_v5 }
 0x585   :  { %950 = vmax.xlane.f32.xlu1 %v949_v10  ;;  %v924_v11 = vpop.f32.mrf.mxu0 }
 0x586   :  { %v935_v12 = vadd.f32 %v924_v11, %v828_v8  ;;  %v946_v53 = vsel %vm945_vm8, %v941_v21, -inf  ;;  %v944_v14 = vadd.f32 %v940_v62, %v936_v9 }
 0x588   :  { %v943_v13 = vadd.f32 %v940_v62, %v935_v12  ;;  %v955_v16 = vsel %vm945_vm8, %v944_v14, -inf }
 0x589   :  { %947 = vmax.xlane.f32.xlu1 %v946_v53 }
 0x58a   :  { %v952_v15 = vsel %vm945_vm8, %v943_v13, -inf }
 0x58b   :  { %953 = vmax.xlane.f32.xlu0 %v952_v15 }
 0x58d   :  { %956 = vmax.xlane.f32.xlu1 %v955_v16 }
 0x60e   :  { %v951_v17 = vpop.xlane.xlu1 %950 }
 0x60f   :  { %v959_v18 = vsub.f32 %v942_v6, %v951_v17 }
 0x611   :  { %v964_v19 = vmul.f32 1.442695, %v959_v18 }
 0x612   :  { %v948_v20 = vpop.xlane.xlu1 %947 }
 0x613   :  { %1244 = vpow2.f32 %v964_v19  ;;  %v958_v22 = vsub.f32 %v941_v21, %v948_v20 }
 0x614   :  { %v954_v23 = vpop.xlane.xlu0 %953 }
 0x615   :  { %v962_v24 = vmul.f32 1.442695, %v958_v22  ;;  %v960_v25 = vsub.f32 %v943_v13, %v954_v23 }
 0x616   :  { %v957_v26 = vpop.xlane.xlu1 %956 }
 0x617   :  { %1246 = vpow2.f32 %v962_v24  ;;  %v966_v27 = vmul.f32 1.442695, %v960_v25  ;;  %v961_v28 = vsub.f32 %v944_v14, %v957_v26 }
 0x619   :  { %1248 = vpow2.f32 %v966_v27  ;;  %v968_v29 = vmul.f32 1.442695, %v961_v28 }
 0x61b   :  { %1250 = vpow2.f32 %v968_v29 }
 0x620   :  { %v1245_v30 = vpop.eup %1244 }
 0x621   :  { %v973_v31 = vsel %vm945_vm8, %v1245_v30, 0.0 }
 0x622   :  { %974 = vadd.xlane.f32.xlu1 %v973_v31 }
 0x624   :  { %v1247_v32 = vpop.eup %1246 }
 0x625   :  { %v970_v33 = vsel %vm945_vm8, %v1247_v32, 0.0 }
 0x626   :  { %v1249_v34 = vpop.eup %1248  ;;  %971 = vadd.xlane.f32.xlu1 %v970_v33 }
 0x627   :  { %v976_v35 = vsel %vm945_vm8, %v1249_v34, 0.0 }
 0x628   :  { %v1251_v36 = vpop.eup %1250 }
 0x629   :  { %v979_v37 = vsel %vm945_vm8, %v1251_v36, 0.0 }
 0x62a   :  { %977 = vadd.xlane.f32.xlu1 %v976_v35 }
 0x62e   :  { %980 = vadd.xlane.f32.xlu1 %v979_v37 }
 0x6ab   :  { %v975_v38 = vpop.xlane.xlu1 %974 }
 0x6ac   :  { %1252 = vlog2.f32 %v975_v38 }
 0x6af   :  { %v972_v39 = vpop.xlane.xlu1 %971 }
 0x6b0   :  { %1254 = vlog2.f32 %v972_v39 }
 0x6b3   :  { %v978_v40 = vpop.xlane.xlu1 %977 }
 0x6b4   :  { %1256 = vlog2.f32 %v978_v40 }
 0x6b7   :  { %v981_v41 = vpop.xlane.xlu1 %980 }
 0x6b8   :  { %1258 = vlog2.f32 %v981_v41 }
 0x6b9   :  { %v1253_v42 = vpop.eup %1252 }
 0x6ba   :  { %v985_v43 = vmul.f32 0.6931472, %v1253_v42 }
 0x6bc   :  { %v991_v44 = vsub.f32 %v959_v18, %v985_v43 }
 0x6bd   :  { %v1255_v45 = vpop.eup %1254 }
 0x6be   :  { %995 = vst.msk [vmem:[%s1502_s3 + $0x8] sm:$0xff] %vm945_vm8, %v991_v44  ;;  %v983_v46 = vmul.f32 0.6931472, %v1255_v45 }
 0x6c0   :  { %v990_v47 = vsub.f32 %v958_v22, %v983_v46 }
 0x6c1   :  { %v1257_v48 = vpop.eup %1256 }
 0x6c2   :  { %994 = vst.msk [vmem:[%s1502_s3] sm:$0xff] %vm945_vm8, %v990_v47  ;;  %v987_v49 = vmul.f32 0.6931472, %v1257_v48 }
 0x6c4   :  { %v992_v50 = vsub.f32 %v960_v25, %v987_v49 }
 0x6c5   :  { %v1259_v51 = vpop.eup %1258 }
 0x6c6   :  { %996 = vst.msk [vmem:[%s1502_s3 + $0x10] sm:$0xff] %vm945_vm8, %v992_v50  ;;  %v989_v52 = vmul.f32 0.6931472, %v1259_v51 }
 0x6c8   :  { %v993_v54 = vsub.f32 %v961_v28, %v989_v52 }
 0x6ca   :  { %997 = vst.msk [vmem:[%s1502_s3 + $0x18] sm:$0xff] %vm945_vm8, %v993_v54 }

</bundles_post_ra>
